<compile_context>
chip_gen: v7x
topology: tpu7x:2x2x1
jax: 0.10.0
libtpu: 0.0.40
codegen_flags: <defaults>
</compile_context>

<pallas_src>
import functools

import jax
import jax.numpy as jnp
from jax.experimental import pallas as pl
from jax.experimental.pallas import tpu as pltpu

LANE = 128      # vreg lane width
SUBLANE = 8     # f32 sublane count

# Fully-resident footprint above which we switch to the layer-streamed kernel
# (keeps comfortably inside v7x's 64 MiB physical VMEM with double buffering).
_STREAM_THRESHOLD_BYTES = 32 << 20
# Above this resident need we explicitly raise the scoped VMEM limit
# (v5e default scoped limit is 16 MiB, v6e/v7x 32 MiB).
_VMEM_LIMIT_TRIGGER_BYTES = 12 << 20


def _round_up(x, m):
    return (x + m - 1) // m * m


def _mm(h, w):
    """MXU matmul with f32 accumulation; casts activations if weights are bf16."""
    if w.dtype != jnp.float32:
        h = h.astype(w.dtype)
    return jnp.dot(h, w, preferred_element_type=jnp.float32)


# --------------------------------------------------------------------------- #
# Kernels
# --------------------------------------------------------------------------- #
def _make_fused_kernel(num_hidden):
    """Grid-less kernel: all layers unrolled, every operand fully resident in VMEM."""
    if num_hidden > 0:
        def kernel(x_ref, w_in_ref, b_in_ref, w_hid_ref, b_hid_ref,
                   w_out_ref, b_out_ref, out_ref):
            h = jax.nn.sigmoid(_mm(x_ref[...], w_in_ref[...]) + b_in_ref[...])
            b_hid = b_hid_ref[...]                       # (Lh, Hp), tiny, resident
            for i in range(num_hidden):                  # static unroll
                h = jax.nn.sigmoid(_mm(h, w_hid_ref[i]) + b_hid[i:i + 1, :])
            out_ref[...] = (_mm(h, w_out_ref[...]) + b_out_ref[...]).astype(out_ref.dtype)
    else:
        def kernel(x_ref, w_in_ref, b_in_ref, w_out_ref, b_out_ref, out_ref):
            h = jax.nn.sigmoid(_mm(x_ref[...], w_in_ref[...]) + b_in_ref[...])
            out_ref[...] = (_mm(h, w_out_ref[...]) + b_out_ref[...]).astype(out_ref.dtype)
    return kernel


def _streamed_kernel(x_ref, w_in_ref, b_in_ref, w_hid_ref, b_hid_ref,
                     w_out_ref, b_out_ref, out_ref, h_ref):
    """grid = (batch_blocks ["parallel"], hidden_layers ["arbitrary"]).

    w_hid_ref sees one (1, Hp, Hp) layer per step (Pallas double-buffers it);
    the running activation lives in h_ref (VMEM scratch, persists across the
    layer axis); output is written only at the last layer.
    """
    l = pl.program_id(1)

    @pl.when(l == 0)
    def _():                                  # input layer + sigmoid
        h_ref[...] = jax.nn.sigmoid(_mm(x_ref[...], w_in_ref[...]) + b_in_ref[...])

    # hidden layer l + sigmoid
    h = jax.nn.sigmoid(_mm(h_ref[...], w_hid_ref[0]) + b_hid_ref[pl.ds(l, 1), :])
    h_ref[...] = h

    @pl.when(l == pl.num_programs(1) - 1)
    def _():                                  # output layer (logits, no sigmoid)
        out_ref[...] = (_mm(h, w_out_ref[...]) + b_out_ref[...]).astype(out_ref.dtype)


# --------------------------------------------------------------------------- #
# Parameter packing (per-interface padding, exact zero padding)
# --------------------------------------------------------------------------- #
def pack_params(weights, biases, param_dtype=jnp.float32):
    """weights[i]: (in_i, out_i) (PyTorch weight transposed), biases[i]: (out_i,).

    Each interface dim is padded independently to the 128-lane width; padded
    weight rows/cols are zero so padded lanes never leak into real outputs.
    Hidden layers (all HxH) are stacked into a single (Lh, Hp, Hp) tensor.
    """
    n_lin = len(weights)
    assert n_lin >= 2, "module always has an input and an output Linear"
    F, H = weights[0].shape
    C = weights[-1].shape[1]
    Fp, Hp, Cp = _round_up(F, LANE), _round_up(H, LANE), _round_up(C, LANE)
    Lh = n_lin - 2

    def pad2(w, rp, cp):
        return (jnp.zeros((rp, cp), param_dtype)
                .at[: w.shape[0], : w.shape[1]].set(w.astype(param_dtype)))

    w_in = pad2(weights[0], Fp, Hp)
    b_in = jnp.zeros((1, Hp), jnp.float32).at[0, :H].set(biases[0].astype(jnp.float32))
    w_out = pad2(weights[-1], Hp, Cp)
    b_out = jnp.zeros((1, Cp), jnp.float32).at[0, :C].set(biases[-1].astype(jnp.float32))

    if Lh > 0:
        w_hid = jnp.stack([pad2(weights[1 + i], Hp, Hp) for i in range(Lh)])
        b_hid = jnp.zeros((Lh, Hp), jnp.float32)
        for i in range(Lh):
            b_hid = b_hid.at[i, :H].set(biases[1 + i].astype(jnp.float32))
    else:
        w_hid, b_hid = None, None

    return {"w_in": w_in, "b_in": b_in, "w_hid": w_hid, "b_hid": b_hid,
            "w_out": w_out, "b_out": b_out}


# --------------------------------------------------------------------------- #
# Forward wrapper
# --------------------------------------------------------------------------- #
@functools.partial(jax.jit, static_argnames=("num_classes", "force_stream"))
def mlp_forward(x, params, num_classes, force_stream=False):
    """x: (B, F) f32.  Returns (B, num_classes) logits (matches forward())."""
    w_in, b_in = params["w_in"], params["b_in"]
    w_out, b_out = params["w_out"], params["b_out"]
    w_hid, b_hid = params["w_hid"], params["b_hid"]

    Fp, Hp = w_in.shape
    Cp = w_out.shape[1]
    Lh = 0 if w_hid is None else w_hid.shape[0]
    mm_dtype = w_in.dtype
    act_isz = mm_dtype.itemsize
    batch, feat = x.shape

    # Fully-resident footprint if we run the grid-less fused kernel.
    size_ops = [w_in, b_in, w_out, b_out]
    if Lh:
        size_ops += [w_hid, b_hid]
    weight_bytes = sum(int(a.size) * a.dtype.itemsize for a in size_ops)
    b_small = _round_up(max(batch, SUBLANE), SUBLANE)
    fused_bytes = weight_bytes + b_small * Fp * act_isz + b_small * Cp * 4

    use_stream = (Lh >= 1) and (force_stream or fused_bytes > _STREAM_THRESHOLD_BYTES)

    def _compiler_params(need_bytes, dim_sem=None):
        kwargs = {}
        if dim_sem is not None:
            kwargs["dimension_semantics"] = dim_sem
        if need_bytes > _VMEM_LIMIT_TRIGGER_BYTES:
            kwargs["vmem_limit_bytes"] = min(int(need_bytes), 100 << 20)
        return pltpu.CompilerParams(**kwargs) if kwargs else None

    if not use_stream:
        # ---- grid-less fused path (small networks) ------------------------ #
        Bp = b_small
        x_pad = (jnp.zeros((Bp, Fp), mm_dtype)
                 .at[:batch, :feat].set(x.astype(mm_dtype)))
        operands = [x_pad, w_in, b_in]
        if Lh:
            operands += [w_hid, b_hid]
        operands += [w_out, b_out]

        vmem = pl.BlockSpec(memory_space=pltpu.MemorySpace.VMEM)
        out = pl.pallas_call(
            _make_fused_kernel(Lh),
            out_shape=jax.ShapeDtypeStruct((Bp, Cp), jnp.float32),
            in_specs=[vmem] * len(operands),
            out_specs=vmem,
            compiler_params=_compiler_params(2 * fused_bytes + (4 << 20)),
        )(*operands)
    else:
        # ---- layer-streamed path (large networks) ------------------------- #
        if b_small > 256:
            Bp, TB = _round_up(b_small, 256), 256   # batch tile sized for 2x256^2 MXU
        else:
            Bp, TB = b_small, b_small
        nb = Bp // TB
        x_pad = (jnp.zeros((Bp, Fp), mm_dtype)
                 .at[:batch, :feat].set(x.astype(mm_dtype)))

        resident = (TB * Fp * act_isz                     # x block
                    + TB * Hp * 4 + TB * Cp * 4           # activation scratch + out block
                    + 2 * Hp * Hp * act_isz               # double-buffered hidden weight
                    + Fp * Hp * act_isz + Hp * Cp * act_isz   # first/last weights (resident)
                    + (Lh + 2) * Hp * 4)                  # biases
        cparams = _compiler_params(2 * resident + (4 << 20),
                                   dim_sem=("parallel", "arbitrary"))
        if cparams is None:
            cparams = pltpu.CompilerParams(
                dimension_semantics=("parallel", "arbitrary"))

        out = pl.pallas_call(
            _streamed_kernel,
            out_shape=jax.ShapeDtypeStruct((Bp, Cp), jnp.float32),
            grid_spec=pltpu.PrefetchScalarGridSpec(
                num_scalar_prefetch=0,
                grid=(nb, Lh),
                in_specs=[
                    pl.BlockSpec((TB, Fp), lambda b, l: (b, 0)),      # x
                    pl.BlockSpec((Fp, Hp), lambda b, l: (0, 0)),      # w_in (resident)
                    pl.BlockSpec((1, Hp), lambda b, l: (0, 0)),       # b_in
                    pl.BlockSpec((1, Hp, Hp), lambda b, l: (l, 0, 0)),  # w_hid: streamed
                    pl.BlockSpec((Lh, Hp), lambda b, l: (0, 0)),      # b_hid (tiny, resident)
                    pl.BlockSpec((Hp, Cp), lambda b, l: (0, 0)),      # w_out (resident)
                    pl.BlockSpec((1, Cp), lambda b, l: (0, 0)),       # b_out
                ],
                out_specs=pl.BlockSpec((TB, Cp), lambda b, l: (b, 0)),
                scratch_shapes=[pltpu.VMEM((TB, Hp), jnp.float32)],
            ),
            compiler_params=cparams,
        )(x_pad, w_in, b_in, w_hid, b_hid, w_out, b_out)

    return out[:batch, :num_classes]


# --------------------------------------------------------------------------- #
# Init / reference
# --------------------------------------------------------------------------- #
def init_params(key, num_features, hidden_layers, hidden_size, num_classes):
    """Deterministic init mimicking PyTorch Linear's U(-1/sqrt(fan_in), 1/sqrt(fan_in))."""
    dims_in = [num_features] + [hidden_size] * hidden_layers + [hidden_size]
    dims_out = [hidden_size] * (hidden_layers + 1) + [num_classes]
    weights, biases = [], []
    for fan_in, fan_out in zip(dims_in, dims_out):
        key, kw, kb = jax.random.split(key, 3)
        bound = 1.0 / jnp.sqrt(jnp.float32(fan_in))
        # stored transposed relative to PyTorch: (in, out)
        w = jax.random.uniform(kw, (fan_in, fan_out), jnp.float32, -bound, bound)
        b = jax.random.uniform(kb, (fan_out,), jnp.float32, -bound, bound)
        weights.append(w)
        biases.append(b)
    return weights, biases


def reference_forward(x, weights, biases):
    """Plain-JAX reference of the same forward pass (unpadded params)."""
    h = x
    n = len(weights)
    for i, (w, b) in enumerate(zip(weights, biases)):
        h = jnp.dot(h, w, preferred_element_type=jnp.float32) + b
        if i < n - 1:
            h = jax.nn.sigmoid(h)
    return h


if __name__ == "__main__":
    # Small shapes consistent with the module's forward.
    batch = 16
    num_features = 64
    hidden_layers = 2
    hidden_size = 32
    num_classes = 8

    key = jax.random.PRNGKey(0)
    key, kx = jax.random.split(key)
    x = jax.random.normal(kx, (batch, num_features), jnp.float32)

    weights, biases = init_params(
        key, num_features, hidden_layers, hidden_size, num_classes
    )
    params = pack_params(weights, biases)          # f32 weights (bit-close to reference)
    ref = reference_forward(x, weights, biases)

    # Grid-less fused path (what small configs take automatically).
    out_fused = jax.block_until_ready(mlp_forward(x, params, num_classes))
    assert out_fused.shape == (batch, num_classes)
    assert jnp.allclose(out_fused, ref, atol=1e-5, rtol=1e-5), "fused path mismatch"

    # Layer-streamed path (what large configs take automatically) exercised at
    # small shapes via force_stream to verify correctness of the streamed grid.
    out_stream = jax.block_until_ready(
        mlp_forward(x, params, num_classes, force_stream=True)
    )
    assert jnp.allclose(out_stream, ref, atol=1e-5, rtol=1e-5), "streamed path mismatch"

    # TODO(synk): the bf16 weight path (pack_params(param_dtype=jnp.bfloat16)) is
    # not self-checked here since it intentionally trades the 1e-5 tolerance for
    # halved weight DMA bytes on v6e/v7x.

    print("KERNEL_OK")
</pallas_src>

<mosaic_0001>
module attributes {stable_mosaic.version = 11 : i64} {
  func.func @kernel(%arg0: memref<16x128xf32, #tpu.memory_space<vmem>>, %arg1: memref<128x128xf32, #tpu.memory_space<vmem>>, %arg2: memref<1x128xf32, #tpu.memory_space<vmem>>, %arg3: memref<2x128x128xf32, #tpu.memory_space<vmem>>, %arg4: memref<2x128xf32, #tpu.memory_space<vmem>>, %arg5: memref<128x128xf32, #tpu.memory_space<vmem>>, %arg6: memref<1x128xf32, #tpu.memory_space<vmem>>, %arg7: memref<16x128xf32, #tpu.memory_space<vmem>>) attributes {dimension_semantics = [], scalar_prefetch = 0 : i64, scratch_operands = 0 : i64, tpu.core_type = #tpu.core_type<tc>} {
    %c0 = arith.constant 0 : index
    %c0_0 = arith.constant 0 : index
    %0 = vector.load %arg0[%c0, %c0_0] : memref<16x128xf32, #tpu.memory_space<vmem>>, vector<16x128xf32>
    %c0_1 = arith.constant 0 : index
    %c0_2 = arith.constant 0 : index
    %1 = vector.load %arg1[%c0_1, %c0_2] : memref<128x128xf32, #tpu.memory_space<vmem>>, vector<128x128xf32>
    %cst = arith.constant dense<0.000000e+00> : vector<16x128xf32>
    %2 = tpu.matmul %0, %1, %cst {dimension_numbers = #tpu.dot_dimension_numbers<[1], [0], [0], [1], [0, 0, 1, 1], [], []>} : vector<16x128xf32>, vector<128x128xf32>, vector<16x128xf32> -> vector<16x128xf32>
    %c0_3 = arith.constant 0 : index
    %c0_4 = arith.constant 0 : index
    %3 = vector.load %arg2[%c0_3, %c0_4] : memref<1x128xf32, #tpu.memory_space<vmem>>, vector<1x128xf32>
    %4 = vector.broadcast %3 : vector<1x128xf32> to vector<16x128xf32>
    %5 = arith.addf %2, %4 : vector<16x128xf32>
    %6 = arith.negf %5 : vector<16x128xf32>
    %7 = math.exp %6 : vector<16x128xf32>
    %cst_5 = arith.constant 1.000000e+00 : f32
    %8 = vector.broadcast %cst_5 : f32 to vector<16x128xf32>
    %9 = arith.addf %8, %7 : vector<16x128xf32>
    %10 = arith.divf %8, %9 : vector<16x128xf32>
    %c0_6 = arith.constant 0 : index
    %c0_7 = arith.constant 0 : index
    %11 = vector.load %arg4[%c0_6, %c0_7] : memref<2x128xf32, #tpu.memory_space<vmem>>, vector<2x128xf32>
    %c0_8 = arith.constant 0 : index
    %c0_9 = arith.constant 0 : index
    %c0_10 = arith.constant 0 : index
    %12 = vector.load %arg3[%c0_8, %c0_9, %c0_10] : memref<2x128x128xf32, #tpu.memory_space<vmem>>, vector<1x128x128xf32>
    %13 = vector.shape_cast %12 : vector<1x128x128xf32> to vector<128x128xf32>
    %cst_11 = arith.constant dense<0.000000e+00> : vector<16x128xf32>
    %14 = tpu.matmul %10, %13, %cst_11 {dimension_numbers = #tpu.dot_dimension_numbers<[1], [0], [0], [1], [0, 0, 1, 1], [], []>} : vector<16x128xf32>, vector<128x128xf32>, vector<16x128xf32> -> vector<16x128xf32>
    %15 = vector.extract_strided_slice %11 {offsets = [0, 0], sizes = [1, 128], strides = [1, 1]} : vector<2x128xf32> to vector<1x128xf32>
    %16 = vector.broadcast %15 : vector<1x128xf32> to vector<16x128xf32>
    %17 = arith.addf %14, %16 : vector<16x128xf32>
    %18 = arith.negf %17 : vector<16x128xf32>
    %19 = math.exp %18 : vector<16x128xf32>
    %cst_12 = arith.constant 1.000000e+00 : f32
    %20 = vector.broadcast %cst_12 : f32 to vector<16x128xf32>
    %21 = arith.addf %20, %19 : vector<16x128xf32>
    %22 = arith.divf %20, %21 : vector<16x128xf32>
    %c1 = arith.constant 1 : index
    %c0_13 = arith.constant 0 : index
    %c0_14 = arith.constant 0 : index
    %23 = vector.load %arg3[%c1, %c0_13, %c0_14] : memref<2x128x128xf32, #tpu.memory_space<vmem>>, vector<1x128x128xf32>
    %24 = vector.shape_cast %23 : vector<1x128x128xf32> to vector<128x128xf32>
    %cst_15 = arith.constant dense<0.000000e+00> : vector<16x128xf32>
    %25 = tpu.matmul %22, %24, %cst_15 {dimension_numbers = #tpu.dot_dimension_numbers<[1], [0], [0], [1], [0, 0, 1, 1], [], []>} : vector<16x128xf32>, vector<128x128xf32>, vector<16x128xf32> -> vector<16x128xf32>
    %26 = vector.extract_strided_slice %11 {offsets = [1, 0], sizes = [1, 128], strides = [1, 1]} : vector<2x128xf32> to vector<1x128xf32>
    %27 = vector.broadcast %26 : vector<1x128xf32> to vector<16x128xf32>
    %28 = arith.addf %25, %27 : vector<16x128xf32>
    %29 = arith.negf %28 : vector<16x128xf32>
    %30 = math.exp %29 : vector<16x128xf32>
    %cst_16 = arith.constant 1.000000e+00 : f32
    %31 = vector.broadcast %cst_16 : f32 to vector<16x128xf32>
    %32 = arith.addf %31, %30 : vector<16x128xf32>
    %33 = arith.divf %31, %32 : vector<16x128xf32>
    %c0_17 = arith.constant 0 : index
    %c0_18 = arith.constant 0 : index
    %34 = vector.load %arg5[%c0_17, %c0_18] : memref<128x128xf32, #tpu.memory_space<vmem>>, vector<128x128xf32>
    %cst_19 = arith.constant dense<0.000000e+00> : vector<16x128xf32>
    %35 = tpu.matmul %33, %34, %cst_19 {dimension_numbers = #tpu.dot_dimension_numbers<[1], [0], [0], [1], [0, 0, 1, 1], [], []>} : vector<16x128xf32>, vector<128x128xf32>, vector<16x128xf32> -> vector<16x128xf32>
    %c0_20 = arith.constant 0 : index
    %c0_21 = arith.constant 0 : index
    %36 = vector.load %arg6[%c0_20, %c0_21] : memref<1x128xf32, #tpu.memory_space<vmem>>, vector<1x128xf32>
    %37 = vector.broadcast %36 : vector<1x128xf32> to vector<16x128xf32>
    %38 = arith.addf %35, %37 : vector<16x128xf32>
    %c0_22 = arith.constant 0 : index
    %c0_23 = arith.constant 0 : index
    %39 = vector.load %arg7[%c0_22, %c0_23] : memref<16x128xf32, #tpu.memory_space<vmem>>, vector<16x128xf32>
    tpu.vector_store %arg7[%c0_22, %c0_23], %38 {strides = array<i32>} : memref<16x128xf32, #tpu.memory_space<vmem>>, vector<16x128xf32>,
    return
  }
}

</mosaic_0001>

<bundles_post_ra>
// kernel: mlp_forward.1
= control target key start
LH: loop header
LB: loop body
LE: loop exit
PB: predicated region body
PF: predicated region fallthrough
CT: control target
= control target key end

     0   :  { %12 = vsyncpa [#allocation3], 0  ;;  %s1066_s0 = inlined_call_operand.vmem [shape: f32[16,128], index: 0, kind: input, shape index: {}]   ;;  %s1067_s1 = inlined_call_operand.hbm [shape: f32[128,128], index: 1, kind: input, shape index: {}]   ;;  %s1068_s2 = inlined_call_operand.vmem [shape: f32[1,128], index: 2, kind: input, shape index: {}]   ;;  %s1069_s3 = inlined_call_operand.hbm [shape: f32[2,128,128], index: 3, kind: input, shape index: {}]   ;;  %s1070_s4 = inlined_call_operand.vmem [shape: f32[2,128], index: 4, kind: input, shape index: {}]   ;;  %s1071_s5 = inlined_call_operand.hbm [shape: f32[128,128], index: 5, kind: input, shape index: {}]   ;;  %s1072_s6 = inlined_call_operand.vmem [shape: f32[1,128], index: 6, kind: input, shape index: {}]   ;;  %s1073_s7 = inlined_call_operand.vmem [shape: f32[16,128], index: 7, kind: output, shape index: {}]  }
   0x1   :  { %13 = vsyncpa [#allocation5], 0  ;;  %s948_s24 = smov [#allocation4]   ;;  %s949_s26 = smov [#allocation2]  }
   0x2   :  { %s35_s25 = sshll.u32 %s948_s24, 4  ;;  %s21_s27 = sshll.u32 %s949_s26, 4  ;;  %s36_s25 = int_to_ptr.vmem [resolvable:$true] %s35_s25  ;;  %s993_s27 = int_to_ptr.vmem [resolvable:$true] %s21_s27 }
   0x3   :  { %s878_s30 = scalar_lea.hbm %s1069_s3, 4096 }
   0x4   :  { %p879_p0 = scmp.ne.s32.totalorder %s1069_s3, %s878_s30  ;;  %p882_p1 = scmp.lt.u32.totalorder %s878_s30, %s1069_s3 }
   0x6   :  { %p884_p2 = pnand %p882_p1, %p879_p0 }
   0x8   :  { %887 = shalt.err (!%p884_p2)
}
   0x9   :  { %s888_s12 = scalar_lea.vmem %s36_s25, 4096  ;;  %p893_p4 = scmp.lt.s32.totalorder %s36_s25, %s36_s25 }
   0xa   :  { %p889_p3 = scmp.ne.s32.totalorder %s36_s25, %s888_s12  ;;  %p894_p5 = scmp.lt.s32.totalorder %s888_s12, %s888_s12 }
   0xc   :  { %p895_p6 = por %p894_p5, %p893_p4 }
   0xe   :  { %p896_p7 = pnand %p895_p6, %p889_p3 }
  0x10   :  { %899 = shalt.err (!%p896_p7)
}
  0x11   :  { %s950_s13 = smov 128   ;;  %s951_s14 = smov 8  }
  0x12   :  { %41 = dma.hbm_to_vmem [thread:$0]  %s1069_s3, 4096, %s36_s25, [#allocation5], %s950_s13, %s950_s13, %s951_s14  }
  0x13   :  { %s900_s19 = scalar_lea.hbm %s1067_s1, 2048 }
  0x14   :  { %p901_p8 = scmp.ne.s32.totalorder %s1067_s1, %s900_s19  ;;  %p904_p9 = scmp.lt.u32.totalorder %s900_s19, %s1067_s1 }
  0x16   :  { %p906_p10 = pnand %p904_p9, %p901_p8 }
  0x18   :  { %909 = shalt.err (!%p906_p10)
}
  0x19   :  { %s910_s24 = scalar_lea.vmem %s993_s27, 2048  ;;  %p915_p12 = scmp.lt.s32.totalorder %s993_s27, %s993_s27 }
  0x1a   :  { %p911_p11 = scmp.ne.s32.totalorder %s993_s27, %s910_s24  ;;  %p916_p13 = scmp.lt.s32.totalorder %s910_s24, %s910_s24 }
  0x1c   :  { %p917_p0 = por %p916_p13, %p915_p12 }
  0x1e   :  { %p918_p1 = pnand %p917_p0, %p911_p11 }
  0x20   :  { %921 = shalt.err (!%p918_p1)
}
  0x21   :  { %27 = dma.hbm_to_vmem [thread:$0]  %s1067_s1, 2048, %s993_s27, [#allocation3], %s950_s13, %s950_s13, %s951_s14  }
  0x22   :  { %s952_s26 = smov [#allocation6]   ;;  %s922_s8 = scalar_lea.hbm %s1071_s5, 2048 }
  0x23   :  { %s49_s28 = sshll.u32 %s952_s26, 4  ;;  %p923_p2 = scmp.ne.s32.totalorder %s1071_s5, %s922_s8  ;;  %s50_s28 = int_to_ptr.vmem [resolvable:$true] %s49_s28 }
  0x24   :  { %p926_p3 = scmp.lt.u32.totalorder %s922_s8, %s1071_s5 }
  0x26   :  { %p928_p4 = pnand %p926_p3, %p923_p2 }
  0x28   :  { %931 = shalt.err (!%p928_p4)
}
  0x29   :  { %s932_s15 = scalar_lea.vmem %s50_s28, 2048  ;;  %p937_p6 = scmp.lt.s32.totalorder %s50_s28, %s50_s28 }
  0x2a   :  { %p933_p5 = scmp.ne.s32.totalorder %s50_s28, %s932_s15  ;;  %p938_p7 = scmp.lt.s32.totalorder %s932_s15, %s932_s15 }
  0x2c   :  { %p939_p8 = por %p938_p7, %p937_p6 }
  0x2e   :  { %p940_p9 = pnand %p939_p8, %p933_p5 }
  0x30   :  { %943 = shalt.err (!%p940_p9)
}
  0x31   :  { %55 = dma.hbm_to_vmem [thread:$0]  %s1071_s5, 2048, %s50_s28, [#allocation5], %s950_s13, %s950_s13, %s951_s14  }
  0x32   :  { %944 = dma.done.wait [#allocation3], 2048  }
  0x33   :  { %945 = vsyncadd [#allocation3], 4294965248 }
  0x34   :  { %946 = dma.done.wait [#allocation5], 6144  }
  0x35   :  { %947 = vsyncadd [#allocation5], 4294961152  ;;  %v69_v0 = vld [vmem:[#allocation2] sm:$0xff]  ;;  %v70_v1 = vld [vmem:[#allocation2 + $0x8] sm:$0xff] }
  0x36   :  { %v71_v2 = vld [vmem:[#allocation2 + $0x10] sm:$0xff]  ;;  %v721_v3 = vpack.c.bf16 %v70_v1, %v69_v0  ;;  %v72_v4 = vld [vmem:[#allocation2 + $0x18] sm:$0xff]  ;;  %v73_v6 = vld [vmem:[#allocation2 + $0x20] sm:$0xff] }
  0x37   :  { %v725_v5 = vpack.c.bf16 %v72_v4, %v71_v2  ;;  %v74_v7 = vld [vmem:[#allocation2 + $0x28] sm:$0xff]  ;;  %v75_v9 = vld [vmem:[#allocation2 + $0x30] sm:$0xff]  ;;  %v67_v10 = vld [vmem:[%s1066_s0] sm:$0xff] }
  0x38   :  { %722 = vmatprep.subr.bf16.mxu0 %v721_v3  ;;  %v729_v8 = vpack.c.bf16 %v74_v7, %v73_v6  ;;  %v76_v11 = vld [vmem:[#allocation2 + $0x38] sm:$0xff]  ;;  %613 = vmatprep.mubr.f32.mxu0 %v67_v10  ;;  %v180_v12 = vld [vmem:[#allocation4] sm:$0xff]  ;;  %v181_v13 = vld [vmem:[#allocation4 + $0x8] sm:$0xff] }
  0x39   :  { %724 = vmatpush3.bf16.msra.mxu0 %v721_v3  ;;  %v753_v14 = vpack.c.bf16 %v181_v13, %v180_v12  ;;  %v733_v15 = vpack.c.bf16 %v76_v11, %v75_v9  ;;  %v77_v16 = vld [vmem:[#allocation2 + $0x40] sm:$0xff]  ;;  %v78_v17 = vld [vmem:[#allocation2 + $0x48] sm:$0xff]  ;;  %v79_v19 = vld [vmem:[#allocation2 + $0x50] sm:$0xff] }
  0x3a   :  { %726 = vmatprep.subr.bf16.mxu0 %v725_v5  ;;  %v737_v18 = vpack.c.bf16 %v78_v17, %v77_v16  ;;  %v80_v20 = vld [vmem:[#allocation2 + $0x58] sm:$0xff]  ;;  %v81_v22 = vld [vmem:[#allocation2 + $0x60] sm:$0xff]  ;;  %v82_v23 = vld [vmem:[#allocation2 + $0x68] sm:$0xff] }
  0x3b   :  { %754 = vmatprep.subr.bf16.mxu1 %v753_v14  ;;  %v741_v21 = vpack.c.bf16 %v80_v20, %v79_v19  ;;  %v745_v24 = vpack.c.bf16 %v82_v23, %v81_v22  ;;  %v83_v25 = vld [vmem:[#allocation2 + $0x70] sm:$0xff]  ;;  %v84_v26 = vld [vmem:[#allocation2 + $0x78] sm:$0xff]  ;;  %v68_v28 = vld [vmem:[%s1066_s0 + $0x8] sm:$0xff] }
  0x3c   :  { %756 = vmatpush3.bf16.msra.mxu1 %v753_v14  ;;  %v749_v27 = vpack.c.bf16 %v84_v26, %v83_v25  ;;  %v182_v29 = vld [vmem:[#allocation4 + $0x10] sm:$0xff]  ;;  %v183_v30 = vld [vmem:[#allocation4 + $0x18] sm:$0xff]  ;;  %v184_v32 = vld [vmem:[#allocation4 + $0x20] sm:$0xff]  ;;  %v196_v26 = vlaneseq }
  0x3d   :  { %728 = vmatpush3.bf16.msra.mxu0 %v725_v5  ;;  %v757_v31 = vpack.c.bf16 %v183_v30, %v182_v29  ;;  %v185_v33 = vld [vmem:[#allocation4 + $0x28] sm:$0xff]  ;;  %v186_v35 = vld [vmem:[#allocation4 + $0x30] sm:$0xff]  ;;  %v187_v36 = vld [vmem:[#allocation4 + $0x38] sm:$0xff] }
  0x3e   :  { %730 = vmatprep.subr.bf16.mxu0 %v729_v8  ;;  %v761_v34 = vpack.c.bf16 %v185_v33, %v184_v32  ;;  %v765_v37 = vpack.c.bf16 %v187_v36, %v186_v35  ;;  %v188_v38 = vld [vmem:[#allocation4 + $0x40] sm:$0xff]  ;;  %v189_v39 = vld [vmem:[#allocation4 + $0x48] sm:$0xff]  ;;  %v190_v41 = vld [vmem:[#allocation4 + $0x50] sm:$0xff] }
  0x3f   :  { %758 = vmatprep.subr.bf16.mxu1 %v757_v31  ;;  %v769_v40 = vpack.c.bf16 %v189_v39, %v188_v38  ;;  %v191_v42 = vld [vmem:[#allocation4 + $0x58] sm:$0xff]  ;;  %v192_v44 = vld [vmem:[#allocation4 + $0x60] sm:$0xff]  ;;  %v193_v45 = vld [vmem:[#allocation4 + $0x68] sm:$0xff] }
  0x40   :  { %760 = vmatpush3.bf16.msra.mxu1 %v757_v31  ;;  %v773_v43 = vpack.c.bf16 %v191_v42, %v190_v41  ;;  %v194_v46 = vld [vmem:[#allocation4 + $0x70] sm:$0xff]  ;;  %v777_v47 = vpack.c.bf16 %v193_v45, %v192_v44  ;;  %v195_v48 = vld [vmem:[#allocation4 + $0x78] sm:$0xff]  ;;  %v288_v50 = vld [vmem:[#allocation4 + $0x80] sm:$0xff] }
  0x41   :  { %732 = vmatpush3.bf16.msra.mxu0 %v729_v8  ;;  %762 = vmatprep.subr.bf16.mxu1 %v761_v34  ;;  %v781_v49 = vpack.c.bf16 %v195_v48, %v194_v46  ;;  %v289_v51 = vld [vmem:[#allocation4 + $0x88] sm:$0xff]  ;;  %v501_v53 = vld [vmem:[%s1068_s2] ss:$0 sm:$0xff]  ;;  %v290_v2 = vld [vmem:[#allocation4 + $0x90] sm:$0xff] }
  0x42   :  { %734 = vmatprep.subr.bf16.mxu0 %v733_v15  ;;  %v785_v52 = vpack.c.bf16 %v289_v51, %v288_v50  ;;  %v291_v3 = vld [vmem:[#allocation4 + $0x98] sm:$0xff]  ;;  %v292_v5 = vld [vmem:[#allocation4 + $0xa0] sm:$0xff]  ;;  %v293_v6 = vld [vmem:[#allocation4 + $0xa8] sm:$0xff] }
  0x43   :  { %v789_v4 = vpack.c.bf16 %v291_v3, %v290_v2  ;;  %v793_v7 = vpack.c.bf16 %v293_v6, %v292_v5  ;;  %v294_v8 = vld [vmem:[#allocation4 + $0xb0] sm:$0xff]  ;;  %v295_v9 = vld [vmem:[#allocation4 + $0xb8] sm:$0xff]  ;;  %v296_v11 = vld [vmem:[#allocation4 + $0xc0] sm:$0xff] }
  0x44   :  { %764 = vmatpush3.bf16.msra.mxu1 %v761_v34  ;;  %v797_v10 = vpack.c.bf16 %v295_v9, %v294_v8  ;;  %v297_v12 = vld [vmem:[#allocation4 + $0xc8] sm:$0xff]  ;;  %v298_v14 = vld [vmem:[#allocation4 + $0xd0] sm:$0xff]  ;;  %v300_v17 = vld [vmem:[#allocation4 + $0xe0] sm:$0xff] }
  0x45   :  { %736 = vmatpush3.bf16.msra.mxu0 %v733_v15  ;;  %766 = vmatprep.subr.bf16.mxu1 %v765_v37  ;;  %v801_v13 = vpack.c.bf16 %v297_v12, %v296_v11  ;;  %v299_v15 = vld [vmem:[#allocation4 + $0xd8] sm:$0xff]  ;;  %v302_v19 = vld [vmem:[#allocation4 + $0xf0] sm:$0xff]  ;;  %v395_v23 = vld [vmem:[#allocation6] sm:$0xff] }
  0x46   :  { %738 = vmatprep.subr.bf16.mxu0 %v737_v18  ;;  %v805_v16 = vpack.c.bf16 %v299_v15, %v298_v14  ;;  %v179_v29 = vld [vmem:[%s1070_s4] sm:$0x3]  ;;  %v398_v44 = vld [vmem:[#allocation6 + $0x18] sm:$0xff] }
  0x47   :  { %v399_v46 = vld [vmem:[#allocation6 + $0x20] sm:$0xff]  ;;  %v402_v50 = vld [vmem:[#allocation6 + $0x38] sm:$0xff] }
  0x48   :  { %768 = vmatpush3.bf16.msra.mxu1 %v765_v37  ;;  %v508_v14 = vld [vmem:[%s1072_s6] ss:$0 sm:$0xff] }
  0x49   :  { %740 = vmatpush3.bf16.msra.mxu0 %v737_v18  ;;  %770 = vmatprep.subr.bf16.mxu1 %v769_v40  ;;  %v301_v18 = vld [vmem:[#allocation4 + $0xe8] sm:$0xff] }
  0x4a   :  { %742 = vmatprep.subr.bf16.mxu0 %v741_v21  ;;  %v809_v20 = vpack.c.bf16 %v301_v18, %v300_v17 }
  0x4c   :  { %772 = vmatpush3.bf16.msra.mxu1 %v769_v40 }
  0x4d   :  { %744 = vmatpush3.bf16.msra.mxu0 %v741_v21  ;;  %774 = vmatprep.subr.bf16.mxu1 %v773_v43  ;;  %v303_v21 = vld [vmem:[#allocation4 + $0xf8] sm:$0xff] }
  0x4e   :  { %746 = vmatprep.subr.bf16.mxu0 %v745_v24  ;;  %v813_v22 = vpack.c.bf16 %v303_v21, %v302_v19 }
  0x50   :  { %776 = vmatpush3.bf16.msra.mxu1 %v773_v43  ;;  %v397_v43 = vld [vmem:[#allocation6 + $0x10] sm:$0xff] }
  0x51   :  { %748 = vmatpush3.bf16.msra.mxu0 %v745_v24  ;;  %778 = vmatprep.subr.bf16.mxu1 %v777_v47  ;;  %v396_v24 = vld [vmem:[#allocation6 + $0x8] sm:$0xff]  ;;  %v821_v45 = vpack.c.bf16 %v398_v44, %v397_v43 }
  0x52   :  { %750 = vmatprep.subr.bf16.mxu0 %v749_v27  ;;  %v817_v25 = vpack.c.bf16 %v396_v24, %v395_v23 }
  0x54   :  { %780 = vmatpush3.bf16.msra.mxu1 %v777_v47  ;;  %v400_v47 = vld [vmem:[#allocation6 + $0x28] sm:$0xff] }
  0x55   :  { %752 = vmatpush3.bf16.msra.mxu0 %v749_v27  ;;  %782 = vmatprep.subr.bf16.mxu1 %v781_v49  ;;  %v197_v27 = vshrl.u32 %v196_v26, 7  ;;  %v825_v48 = vpack.c.bf16 %v400_v47, %v399_v46 }
  0x56   :  { %786 = vmatprep.subr.bf16.mxu0 %v785_v52 }
  0x58   :  { %614 = vmatmul.mubr.f32.vlgmr.msra.gmra.mrb[0].mxu0 %v68_v28  ;;  %784 = vmatpush3.bf16.msra.mxu1 %v781_v49  ;;  %v198_v28 = vsub.s32 0, %v197_v27  ;;  %v401_v49 = vld [vmem:[#allocation6 + $0x30] sm:$0xff] }
  0x59   :  { %788 = vmatpush3.bf16.msra.mxu0 %v785_v52  ;;  %818 = vmatprep.subr.bf16.mxu1 %v817_v25  ;;  %v829_v51 = vpack.c.bf16 %v402_v50, %v401_v49  ;;  %v403_v52 = vld [vmem:[#allocation6 + $0x40] sm:$0xff] }
  0x5a   :  { %790 = vmatprep.subr.bf16.mxu0 %v789_v4  ;;  %v199_v30 = vrot.slane %v179_v29, %v198_v28 }
  0x5d   :  { %792 = vmatpush3.bf16.msra.mxu0 %v789_v4 }
  0x5e   :  { %794 = vmatprep.subr.bf16.mxu0 %v793_v7 }
  0x61   :  { %796 = vmatpush3.bf16.msra.mxu0 %v793_v7 }
  0x62   :  { %798 = vmatprep.subr.bf16.mxu0 %v797_v10 }
  0x65   :  { %800 = vmatpush3.bf16.msra.mxu0 %v797_v10 }
  0x66   :  { %802 = vmatprep.subr.bf16.mxu0 %v801_v13 }
  0x69   :  { %804 = vmatpush3.bf16.msra.mxu0 %v801_v13 }
  0x6a   :  { %806 = vmatprep.subr.bf16.mxu0 %v805_v16 }
  0x6d   :  { %808 = vmatpush3.bf16.msra.mxu0 %v805_v16 }
  0x6e   :  { %810 = vmatprep.subr.bf16.mxu0 %v809_v20 }
  0x71   :  { %812 = vmatpush3.bf16.msra.mxu0 %v809_v20 }
  0x72   :  { %814 = vmatprep.subr.bf16.mxu0 %v813_v22 }
  0x75   :  { %816 = vmatpush3.bf16.msra.mxu0 %v813_v22 }
 0x12b   :  { %v615_v54 = vpop.f32.mrb[0].mxu0 }
 0x12c   :  { %v164_v55 = vadd.f32 %v615_v54, %v501_v53  ;;  %v158_v56 = vpop.f32.mrb[1].mxu0 }
 0x12d   :  { %v159_v57 = vadd.f32 %v501_v53, %v158_v56  ;;  %v404_v53 = vld [vmem:[#allocation6 + $0x48] sm:$0xff]  ;;  %v406_v56 = vld [vmem:[#allocation6 + $0x58] sm:$0xff] }
 0x12e   :  { %v503_v58 = vmul.f32 -1.442695, %v164_v55  ;;  %v833_v54 = vpack.c.bf16 %v404_v53, %v403_v52  ;;  %v405_v55 = vld [vmem:[#allocation6 + $0x50] sm:$0xff] }
 0x12f   :  { %v502_v59 = vmul.f32 -1.442695, %v159_v57  ;;  %v837_v57 = vpack.c.bf16 %v406_v56, %v405_v55 }
 0x130   :  { %854 = vpow2.f32 %v503_v58  ;;  %v407_v58 = vld [vmem:[#allocation6 + $0x60] sm:$0xff] }
 0x131   :  { %856 = vpow2.f32 %v502_v59  ;;  %v408_v59 = vld [vmem:[#allocation6 + $0x68] sm:$0xff] }
 0x13a   :  { %v855_v60 = vpop.eup %854 }
 0x13b   :  { %v857_v61 = vpop.eup %856  ;;  %v174_v62 = vadd.f32 1.0, %v855_v60  ;;  %v409_v60 = vld [vmem:[#allocation6 + $0x70] sm:$0xff] }
 0x13c   :  { %v173_v63 = vadd.f32 1.0, %v857_v61  ;;  %v841_v61 = vpack.c.bf16 %v408_v59, %v407_v58 }
 0x13e   :  { %858 = vrcp.f32 %v173_v63 }
 0x13f   :  { %860 = vrcp.f32 %v174_v62  ;;  %v410_v62 = vld [vmem:[#allocation6 + $0x78] sm:$0xff] }
 0x140   :  { %v845_v63 = vpack.c.bf16 %v410_v62, %v409_v60 }
 0x148   :  { %v859_v0 = vpop.eup %858 }
 0x149   :  { %v861_v1 = vpop.eup %860  ;;  %648 = vmatprep.mubr.f32.mxu1 %v859_v0  ;;  %v306_v0 = vsub.s32 1, %v197_v27 }
 0x14a   :  { %649 = vmatmul.mubr.f32.vlgmr.msra.gmra.mrb[0].mxu1 %v861_v1 }
 0x14b   :  { %820 = vmatpush3.bf16.msra.mxu1 %v817_v25  ;;  %v307_v1 = vrot.slane %v179_v29, %v306_v0 }
 0x14c   :  { %822 = vmatprep.subr.bf16.mxu1 %v821_v45 }
 0x14f   :  { %824 = vmatpush3.bf16.msra.mxu1 %v821_v45 }
 0x150   :  { %826 = vmatprep.subr.bf16.mxu1 %v825_v48 }
 0x153   :  { %828 = vmatpush3.bf16.msra.mxu1 %v825_v48 }
 0x154   :  { %830 = vmatprep.subr.bf16.mxu1 %v829_v51 }
 0x157   :  { %832 = vmatpush3.bf16.msra.mxu1 %v829_v51 }
 0x158   :  { %834 = vmatprep.subr.bf16.mxu1 %v833_v54 }
 0x15b   :  { %836 = vmatpush3.bf16.msra.mxu1 %v833_v54 }
 0x15c   :  { %838 = vmatprep.subr.bf16.mxu1 %v837_v57 }
 0x15f   :  { %840 = vmatpush3.bf16.msra.mxu1 %v837_v57 }
 0x160   :  { %842 = vmatprep.subr.bf16.mxu1 %v841_v61 }
 0x163   :  { %844 = vmatpush3.bf16.msra.mxu1 %v841_v61 }
 0x164   :  { %846 = vmatprep.subr.bf16.mxu1 %v845_v63 }
 0x167   :  { %848 = vmatpush3.bf16.msra.mxu1 %v845_v63 }
 0x21d   :  { %v650_v31 = vpop.f32.mrb[0].mxu1 }
 0x21e   :  { %v272_v32 = vadd.f32 %v650_v31, %v199_v30  ;;  %v266_v33 = vpop.f32.mrb[1].mxu1 }
 0x21f   :  { %v267_v34 = vadd.f32 %v266_v33, %v199_v30 }
 0x220   :  { %v505_v35 = vmul.f32 -1.442695, %v272_v32 }
 0x221   :  { %v504_v36 = vmul.f32 -1.442695, %v267_v34 }
 0x222   :  { %862 = vpow2.f32 %v505_v35 }
 0x223   :  { %864 = vpow2.f32 %v504_v36 }
 0x22c   :  { %v863_v37 = vpop.eup %862 }
 0x22d   :  { %v865_v38 = vpop.eup %864  ;;  %v282_v39 = vadd.f32 1.0, %v863_v37 }
 0x22e   :  { %v281_v40 = vadd.f32 1.0, %v865_v38 }
 0x230   :  { %866 = vrcp.f32 %v281_v40 }
 0x231   :  { %868 = vrcp.f32 %v282_v39 }
 0x23a   :  { %v867_v41 = vpop.eup %866 }
 0x23b   :  { %v869_v42 = vpop.eup %868  ;;  %683 = vmatprep.mubr.f32.mxu0 %v867_v41 }
 0x23c   :  { %684 = vmatmul.mubr.f32.vlgmr.msra.gmra.mrb[2].mxu0 %v869_v42 }
 0x30f   :  { %v685_v2 = vpop.f32.mrb[2].mxu0 }
 0x310   :  { %v380_v3 = vadd.f32 %v685_v2, %v307_v1  ;;  %v374_v4 = vpop.f32.mrb[3].mxu0 }
 0x311   :  { %v375_v5 = vadd.f32 %v374_v4, %v307_v1 }
 0x312   :  { %v507_v6 = vmul.f32 -1.442695, %v380_v3 }
 0x313   :  { %v506_v7 = vmul.f32 -1.442695, %v375_v5 }
 0x314   :  { %870 = vpow2.f32 %v507_v6 }
 0x315   :  { %872 = vpow2.f32 %v506_v7 }
 0x31e   :  { %v871_v8 = vpop.eup %870 }
 0x31f   :  { %v873_v9 = vpop.eup %872  ;;  %v390_v10 = vadd.f32 1.0, %v871_v8 }
 0x320   :  { %v389_v11 = vadd.f32 1.0, %v873_v9 }
 0x322   :  { %874 = vrcp.f32 %v389_v11 }
 0x323   :  { %876 = vrcp.f32 %v390_v10 }
 0x32c   :  { %v875_v12 = vpop.eup %874 }
 0x32d   :  { %v877_v13 = vpop.eup %876  ;;  %718 = vmatprep.mubr.f32.mxu1 %v875_v12 }
 0x32e   :  { %719 = vmatmul.mubr.f32.vlgmr.msra.gmra.mrb[2].mxu1 %v877_v13 }
 0x401   :  { %v720_v15 = vpop.f32.mrb[2].mxu1 }
 0x402   :  { %v490_v16 = vadd.f32 %v720_v15, %v508_v14  ;;  %v484_v17 = vpop.f32.mrb[3].mxu1 }
 0x403   :  { %v485_v18 = vadd.f32 %v508_v14, %v484_v17 }
 0x404   :  { %494 = vst [vmem:[%s1073_s7 + $0x8] sm:$0xff] %v490_v16 }
 0x405   :  { %493 = vst [vmem:[%s1073_s7] sm:$0xff] %v485_v18 }
 0x406   :  { %499 = vsyncpa [#allocation3], 1 }
 0x407   :  { %500 = vsyncpa [#allocation5], 1 }

</bundles_post_ra>
